<compile_context>
chip_gen: v5e
topology: v5e:2x2
jax: 0.10.0
libtpu: 0.0.40
codegen_flags: <defaults>
</compile_context>

<pallas_src>
import jax
import jax.numpy as jnp
from jax.experimental import pallas as pl
from jax.experimental.pallas import tpu as pltpu

_LANES = 128


def linear_kernel(x_ref, w_ref, b_ref, o_ref):
    # x_ref: (in_f, TB) VMEM   (features on sublanes, batch on lanes)
    # w_ref: (in_f,)    SMEM   (scalar weights)
    # b_ref: (1,)       SMEM   (scalar bias)
    # o_ref: (1, TB)    VMEM   (lane-dense output row)
    in_f = x_ref.shape[0]
    acc = x_ref[0:1, :] * w_ref[0] + b_ref[0]      # (1, TB) f32 on the VPU
    for f in range(1, in_f):                        # fully unrolled (in_f == 4)
        acc = acc + x_ref[f:f + 1, :] * w_ref[f]
    o_ref[...] = acc.astype(o_ref.dtype)


def linear_forward(x, weight, bias, *, block_b=2048):
    """Forward of nn.Linear(4, 1).

    x:      (B, in_f) float32
    weight: (out_f, in_f) float32  (PyTorch layout, out_f == 1)
    bias:   (out_f,) float32
    returns (B, out_f) float32
    """
    B, in_f = x.shape
    out_f = weight.shape[0]
    assert weight.shape == (out_f, in_f) and bias.shape == (out_f,)
    assert out_f == 1, "kernel specialized to Linear(in_f, 1)"

    # Batch tile: multiple of the 128-lane width, no bigger than needed.
    block_b = max(_LANES, (block_b // _LANES) * _LANES)
    tb = min(block_b, pl.cdiv(B, _LANES) * _LANES)
    b_pad = pl.cdiv(B, tb) * tb

    # Layout plumbing in the wrapper: batch -> lanes, pad to the tile boundary.
    xt = x.T                                        # (in_f, B)
    if b_pad != B:
        xt = jnp.pad(xt, ((0, 0), (0, b_pad - B)))

    out = pl.pallas_call(
        linear_kernel,
        out_shape=jax.ShapeDtypeStruct((out_f, b_pad), x.dtype),
        grid_spec=pltpu.PrefetchScalarGridSpec(
            num_scalar_prefetch=0,
            grid=(b_pad // tb,),
            in_specs=[
                pl.BlockSpec((in_f, tb), lambda i: (0, i)),          # x tile
                pl.BlockSpec(memory_space=pltpu.MemorySpace.SMEM),   # weight
                pl.BlockSpec(memory_space=pltpu.MemorySpace.SMEM),   # bias
            ],
            out_specs=pl.BlockSpec((out_f, tb), lambda i: (0, i)),
        ),
        compiler_params=pltpu.CompilerParams(
            dimension_semantics=("parallel",),
        ),
    )(xt, weight.reshape(-1), bias)

    # (out_f, b_pad) -> (B, out_f), dropping padded lanes.
    return out[:, :B].T


if __name__ == "__main__":
    key = jax.random.PRNGKey(0)
    kx, kw, kb = jax.random.split(key, 3)

    B, IN_F, OUT_F = 8, 4, 1

    # Deterministic parameter init (PyTorch Linear-style U(-1/sqrt(in), 1/sqrt(in))).
    bound = 1.0 / jnp.sqrt(jnp.float32(IN_F))
    weight = jax.random.uniform(kw, (OUT_F, IN_F), jnp.float32, -bound, bound)
    bias = jax.random.uniform(kb, (OUT_F,), jnp.float32, -bound, bound)

    x = jax.random.normal(kx, (B, IN_F), jnp.float32)

    out = jax.block_until_ready(linear_forward(x, weight, bias))
    ref = x @ weight.T + bias
    assert out.shape == (B, OUT_F)
    assert jnp.allclose(out, ref, atol=1e-5), (out, ref)

    # Exercise the multi-tile / remainder path (grid of 3, batch not a tile
    # multiple) to validate the padded-lane handling.
    B2 = 300
    x2 = jax.random.normal(kb, (B2, IN_F), jnp.float32)
    out2 = jax.block_until_ready(linear_forward(x2, weight, bias, block_b=128))
    ref2 = x2 @ weight.T + bias
    assert out2.shape == (B2, OUT_F)
    assert jnp.allclose(out2, ref2, atol=1e-5)

    print("KERNEL_OK")
</pallas_src>

<mosaic_0001>
module attributes {stable_mosaic.version = 11 : i64} {
  func.func @linear_kernel(%arg0: i32, %arg1: memref<4x128xf32, #tpu.memory_space<vmem>>, %arg2: memref<4xf32, #tpu.memory_space<smem>>, %arg3: memref<1xf32, #tpu.memory_space<smem>>, %arg4: memref<1x128xf32, #tpu.memory_space<vmem>>) attributes {dimension_semantics = [#tpu.dimension_semantics<parallel>], iteration_bounds = array<i64: 1>, scalar_prefetch = 0 : i64, scratch_operands = 0 : i64, tpu.core_type = #tpu.core_type<tc>, window_params = [{transform_indices = @transform_0, window_bounds = array<i64: 4, 128>}, {transform_indices = @transform_1, window_bounds = array<i64: 4>}, {transform_indices = @transform_2, window_bounds = array<i64: 1>}, {transform_indices = @transform_3, window_bounds = array<i64: 1, 128>}]} {
    %c0 = arith.constant 0 : index
    %c0_0 = arith.constant 0 : index
    %0 = vector.load %arg1[%c0, %c0_0] : memref<4x128xf32, #tpu.memory_space<vmem>>, vector<1x128xf32>
    %c0_1 = arith.constant 0 : index
    %1 = memref.load %arg2[%c0_1] : memref<4xf32, #tpu.memory_space<smem>>
    %2 = vector.broadcast %1 : f32 to vector<1x128xf32>
    %3 = arith.mulf %0, %2 : vector<1x128xf32>
    %c0_2 = arith.constant 0 : index
    %4 = memref.load %arg3[%c0_2] : memref<1xf32, #tpu.memory_space<smem>>
    %5 = vector.broadcast %4 : f32 to vector<1x128xf32>
    %6 = arith.addf %3, %5 : vector<1x128xf32>
    %c1 = arith.constant 1 : index
    %c0_3 = arith.constant 0 : index
    %7 = vector.load %arg1[%c1, %c0_3] : memref<4x128xf32, #tpu.memory_space<vmem>>, vector<1x128xf32>
    %c1_4 = arith.constant 1 : index
    %8 = memref.load %arg2[%c1_4] : memref<4xf32, #tpu.memory_space<smem>>
    %9 = vector.broadcast %8 : f32 to vector<1x128xf32>
    %10 = arith.mulf %7, %9 : vector<1x128xf32>
    %11 = arith.addf %6, %10 : vector<1x128xf32>
    %c2 = arith.constant 2 : index
    %c0_5 = arith.constant 0 : index
    %12 = vector.load %arg1[%c2, %c0_5] : memref<4x128xf32, #tpu.memory_space<vmem>>, vector<1x128xf32>
    %c2_6 = arith.constant 2 : index
    %13 = memref.load %arg2[%c2_6] : memref<4xf32, #tpu.memory_space<smem>>
    %14 = vector.broadcast %13 : f32 to vector<1x128xf32>
    %15 = arith.mulf %12, %14 : vector<1x128xf32>
    %16 = arith.addf %11, %15 : vector<1x128xf32>
    %c3 = arith.constant 3 : index
    %c0_7 = arith.constant 0 : index
    %17 = vector.load %arg1[%c3, %c0_7] : memref<4x128xf32, #tpu.memory_space<vmem>>, vector<1x128xf32>
    %c3_8 = arith.constant 3 : index
    %18 = memref.load %arg2[%c3_8] : memref<4xf32, #tpu.memory_space<smem>>
    %19 = vector.broadcast %18 : f32 to vector<1x128xf32>
    %20 = arith.mulf %17, %19 : vector<1x128xf32>
    %21 = arith.addf %16, %20 : vector<1x128xf32>
    %c0_9 = arith.constant 0 : index
    %c0_10 = arith.constant 0 : index
    %22 = vector.load %arg4[%c0_9, %c0_10] : memref<1x128xf32, #tpu.memory_space<vmem>>, vector<1x128xf32>
    tpu.vector_store %arg4[%c0_9, %c0_10], %21 {strides = array<i32>} : memref<1x128xf32, #tpu.memory_space<vmem>>, vector<1x128xf32>,
    return
  }
  func.func @transform_0(%arg0: i32) -> (i32, i32) {
    %c0_i32 = arith.constant 0 : i32
    %c0_i32_0 = arith.constant 0 : i32
    return %c0_i32, %arg0 : i32, i32
  }
  func.func @transform_1(%arg0: i32) -> i32 {
    %c0_i32 = arith.constant 0 : i32
    %c0_i32_0 = arith.constant 0 : i32
    return %c0_i32 : i32
  }
  func.func @transform_2(%arg0: i32) -> i32 {
    %c0_i32 = arith.constant 0 : i32
    %c0_i32_0 = arith.constant 0 : i32
    return %c0_i32 : i32
  }
  func.func @transform_3(%arg0: i32) -> (i32, i32) {
    %c0_i32 = arith.constant 0 : i32
    %c0_i32_0 = arith.constant 0 : i32
    return %c0_i32, %arg0 : i32, i32
  }
}

</mosaic_0001>

<bundles_post_ra>
// kernel: tpu_custom_call.1
= control target key start
LH: loop header
LB: loop body
LE: loop exit
PB: predicated region body
PF: predicated region fallthrough
CT: control target
= control target key end

     0   :  { %9 = vsyncpa [#allocation4], 0  ;;  %s191_s0 = inlined_call_operand.hbm [shape: f32[4,128], index: 0, kind: input, shape index: {}]   ;;  %s192_s1 = inlined_call_operand.vmem [shape: f32[4], index: 1, kind: input, shape index: {}]   ;;  %s193_s2 = inlined_call_operand.<no memory space> [shape: f32[1], index: 2, kind: input, shape index: {}]   ;;  %s194_s3 = inlined_call_operand.hbm [shape: f32[1,128], index: 3, kind: output, shape index: {}]  }
   0x1   :  { %10 = vsyncpa [#allocation6], 0 }
   0x2   :  { %11 = vsyncpa [#allocation5], 0  ;;  %s17_s14 = sshll.u32 %s191_s0, 4  ;;  %s156_s15 = smov [#allocation3]   ;;  %s18_s14 = int_to_ptr.hbm [resolvable:$true] %s17_s14 }
   0x3   :  { %s19_s16 = sshll.u32 %s156_s15, 4  ;;  %s28_s19 = sshll.u32 %s192_s1, 4  ;;  %s20_s16 = int_to_ptr.vmem [resolvable:$true] %s19_s16  ;;  %s29_s19 = int_to_ptr.vmem [resolvable:$true] %s28_s19 }
   0x4   :  { %22 = dma.hbm_to_vmem [thread:$0]  %s18_s14, 64, %s20_s16, [#allocation4]  }
   0x5   :  { %s157_s20 = smov [#allocation7]  }
   0x6   :  { %31 = dma.vmem_to_smem %s29_s19, 16, %s157_s20, [#allocation6]  }
   0x7   :  { %150 = dma.done.wait [#allocation4], 64  }
   0x8   :  { %151 = vsyncadd [#allocation4], 4294967232 }
   0x9   :  { %152 = dma.done.wait [#allocation6], 16  }
   0xa   :  { %153 = vsyncadd [#allocation6], 4294967280 }
   0xb   :  { %42 = sfence }
   0xc   :  { %s44_s21 = sld [smem:[#allocation7]]  ;;  %v43_v0 = vld [vmem:[#allocation3] sm:$0x1]  ;;  %v50_v1 = vld [vmem:[#allocation3 + $0x1] sm:$0x1]  ;;  %v48_v3 = vstv %s193_s2  ;;  %s158_s1 = smov [#allocation8]  }
   0xd   :  { %s84_s22 = sld [smem:[#allocation7 + $0x1]]  ;;  %v55_v4 = vld [vmem:[#allocation3 + $0x2] sm:$0x1]  ;;  %v60_v9 = vld [vmem:[#allocation3 + $0x3] sm:$0x1]  ;;  %s71_s26 = sshll.u32 %s158_s1, 4  ;;  %s72_s26 = int_to_ptr.vmem [resolvable:$true] %s71_s26 }
   0xe   :  { %s85_s0 = sld [smem:[#allocation7 + $0x2]]  ;;  %s73_s29 = sshll.u32 %s194_s3, 4  ;;  %s74_s29 = int_to_ptr.hbm [resolvable:$true] %s73_s29 }
   0xf   :  { %s86_s23 = sld [smem:[#allocation7 + $0x3]] }
  0x12   :  { %v45_v2 = vstv %s44_s21 }
  0x13   :  { %v46_v5 = vmul.f32 %v45_v2, %v43_v0  ;;  %v52_v6 = vstv %s84_s22 }
  0x14   :  { %v53_v7 = vmul.f32 %v52_v6, %v50_v1  ;;  %v57_v8 = vstv %s85_s0 }
  0x15   :  { %v49_v10 = vadd.f32 %v48_v3, %v46_v5  ;;  %v58_v11 = vmul.f32 %v57_v8, %v55_v4  ;;  %v62_v12 = vstv %s86_s23 }
  0x16   :  { %v63_v14 = vmul.f32 %v62_v12, %v60_v9 }
  0x17   :  { %v54_v13 = vadd.f32 %v53_v7, %v49_v10 }
  0x19   :  { %v59_v15 = vadd.f32 %v58_v11, %v54_v13 }
  0x1b   :  { %v64_v16 = vadd.f32 %v63_v14, %v59_v15 }
  0x1d   :  { %65 = vst [vmem:[#allocation8] sm:$0x1] %v64_v16 }
  0x1e   :  { %76 = dma.vmem_to_hbm [thread:$0]  %s72_s26, 16, %s74_s29, [#allocation5]  }
  0x1f   :  { %154 = dma.done.wait [#allocation5], 16  }
  0x20   :  { %155 = vsyncadd [#allocation5], 4294967280 }
  0x21   :  { %81 = vsyncpa [#allocation4], 1 }
  0x22   :  { %82 = vsyncpa [#allocation5], 1 }
  0x23   :  { %83 = vsyncpa [#allocation6], 1 }

</bundles_post_ra>
